<compile_context>
chip_gen: v6e
topology: v6e:2x2x1
jax: 0.10.0
libtpu: 0.0.40
codegen_flags: <defaults>
</compile_context>

<pallas_src>
import math

import jax
import jax.numpy as jnp
from jax import lax
from jax.experimental import pallas as pl
from jax.experimental.pallas import tpu as pltpu


def _vmf_logits_kernel(scale_ref, kappa_ref, mu_ref, noise_ref, tgt_ref, bias_ref,
                       out_ref):
    """scale/kappa: (1,) f32 SMEM; mu: (TB,D) f32; noise: (TB,K,D) f32;
    tgt: (D,Cp) f32 (pre-normalized, transposed, class-padded); bias: (1,Cp) f32
    (0 for real classes, -1e30 for padded lanes); out: (TB,Cp) f32."""
    tb, k, d = noise_ref.shape
    cp = out_ref.shape[-1]

    sc = scale_ref[0]
    kappa = kappa_ref[0]

    # Unit mean directions for this batch tile (F.normalize semantics).
    mu = mu_ref[...]
    mu = mu * lax.rsqrt(jnp.maximum(jnp.sum(mu * mu, axis=-1, keepdims=True), 1e-24))

    # Tangent-Gaussian vMF sample surrogate; the row norm is folded into the
    # scores below so normalize(x) is never materialized.
    # TODO(synk): VMFDistribution.sample uses Wood's rejection sampling; we
    # approximate with normalize(kappa * mu + N(0, I)).
    x = kappa * mu[:, None, :] + noise_ref[...]                       # (TB,K,D) f32
    inv_norm = lax.rsqrt(jnp.maximum(jnp.sum(x * x, axis=-1, keepdims=True), 1e-24))

    # Single flat 2-D MXU matmul, f32 operands, f32 accumulation.
    dots = jnp.dot(x.reshape(tb * k, d), tgt_ref[...],
                   preferred_element_type=jnp.float32)                # (TB*K, Cp)
    scores = dots.reshape(tb, k, cp) * (sc * inv_norm) + bias_ref[...]

    # logits = log(mean_k softmax_c(scores)) — same op order as the reference,
    # one full-tensor exp + one (TB,Cp) log on the EUP.
    m_c = jnp.max(scores, axis=-1, keepdims=True)                     # (TB,K,1)
    p = jnp.exp(scores - m_c)                                         # (TB,K,Cp)
    denom = jnp.sum(p, axis=-1, keepdims=True)                        # (TB,K,1)
    mean_probs = jnp.sum(p * (1.0 / denom), axis=1) * (1.0 / k)       # (TB,Cp)
    out_ref[...] = jnp.log(mean_probs).astype(out_ref.dtype)


def vmf_classifier_forward(parameters, weight, log_scale, *, sample_size, kappa,
                           seed=0, block_b=None):
    """Inference branch of VMFClassifier.forward (labels=None, deterministic_target=True)."""
    B, D = parameters.shape
    C, _ = weight.shape
    K = sample_size

    sc = jnp.exp(jnp.asarray(log_scale, jnp.float32)).reshape(1)      # _get_scale()
    kap = jnp.asarray(kappa, jnp.float32).reshape(1)

    # Hoisted, grid-invariant target prep: L2-normalize, transpose to (D, Cp),
    # pad class axis to a multiple of 128 lanes (lane-dense output stores).
    Cp = max(128, ((C + 127) // 128) * 128)
    w = weight.astype(jnp.float32)
    w = w * lax.rsqrt(jnp.maximum(jnp.sum(w * w, axis=-1, keepdims=True), 1e-24))
    tgt = jnp.zeros((D, Cp), jnp.float32).at[:, :C].set(w.T)

    # Precomputed additive mask for padded class lanes (replaces in-kernel iota+where).
    bias = jnp.where(jnp.arange(Cp) < C, 0.0, -1e30).astype(jnp.float32).reshape(1, Cp)

    # vMF sampling noise drawn once in the wrapper (TPU PRNG primitives have no
    # interpret-mode lowering); values for the first B rows are independent of
    # any later padding / tiling, so results are tile-size invariant.
    noise = jax.random.normal(jax.random.PRNGKey(seed), (B, K, D), dtype=jnp.float32)

    # Per-chip VMEM budget → batch tile size. v7x has 64 MiB physical VMEM,
    # v5e/v6e have 128 MiB; keep ~25% headroom for the compiler.
    try:
        vmem_phys = int(pltpu.get_tpu_info().vmem_capacity_bytes)
    except Exception:
        vmem_phys = 64 * 1024 * 1024                                  # v7x floor
    vmem_limit = min((vmem_phys * 3) // 4, 96 * 1024 * 1024)

    B8 = ((B + 7) // 8) * 8
    if block_b is None:
        # Live set per grid step (bytes per batch row):
        #   params + noise + out tiles (double-buffered) + f32 intermediates.
        per_row = (2 * D * 4 + 2 * K * D * 4 + 2 * Cp * 4
                   + 2 * K * D * 4 + 3 * K * Cp * 4)
        resident = 2 * D * Cp * 4 + Cp * 4                            # targets (dbl-buf) + bias
        budget = (vmem_limit * 3) // 5 - resident
        TB = max(8, min(512, budget // per_row))
        TB = (TB // 8) * 8
        TB = min(TB, B8)
        if B8 // TB < 2 and B8 >= 16:                                 # keep both TCs busy
            TB = max(8, ((B8 // 2) // 8) * 8)
    else:
        TB = block_b
    assert TB % 8 == 0, "batch tile must be sublane-aligned (multiple of 8)"

    # Pad the batch to a multiple of the tile (padded rows are sliced off below).
    Bp = ((B8 + TB - 1) // TB) * TB
    params = parameters.astype(jnp.float32)
    if Bp != B:
        params = jnp.concatenate([params, jnp.ones((Bp - B, D), jnp.float32)], axis=0)
        noise = jnp.concatenate([noise, jnp.zeros((Bp - B, K, D), jnp.float32)], axis=0)

    cost = pl.CostEstimate(
        flops=2 * Bp * K * D * Cp,
        transcendentals=Bp * K * Cp + Bp * Cp,
        bytes_accessed=Bp * D * 4 + Bp * K * D * 4 + D * Cp * 4 + Bp * Cp * 4)

    out = pl.pallas_call(
        _vmf_logits_kernel,
        out_shape=jax.ShapeDtypeStruct((Bp, Cp), jnp.float32),
        grid=(Bp // TB,),
        in_specs=[
            pl.BlockSpec(memory_space=pltpu.MemorySpace.SMEM),        # scale
            pl.BlockSpec(memory_space=pltpu.MemorySpace.SMEM),        # kappa
            pl.BlockSpec((TB, D), lambda i: (i, 0)),                  # params batch tile
            pl.BlockSpec((TB, K, D), lambda i: (i, 0, 0)),            # noise batch tile
            pl.BlockSpec((D, Cp), lambda i: (0, 0)),                  # targets (grid-invariant)
            pl.BlockSpec((1, Cp), lambda i: (0, 0)),                  # class-pad bias
        ],
        out_specs=pl.BlockSpec((TB, Cp), lambda i: (i, 0)),
        compiler_params=pltpu.CompilerParams(
            dimension_semantics=("parallel",),                        # 2 TCs on v7x
            vmem_limit_bytes=vmem_limit),
        cost_estimate=cost,
    )(sc, kap, params, noise, tgt, bias)

    return out[:B, :C].astype(parameters.dtype)


if __name__ == "__main__":
    # Small deterministic setup consistent with the module:
    #   embedding dim = 32, num_classes = 16, batch = 16, sample_size = 8
    B, D, C, K = 16, 32, 16, 8
    lsk = 0.7                     # kappa_confidence (default)
    initial_log_scale = 2.773     # scale == 'trainable' default init

    key = jax.random.PRNGKey(0)
    k_w, k_p = jax.random.split(key, 2)

    # __init__ (deterministic_target=True):
    #   means = randn(C, D) * lsk / (1 - lsk^2) * (D - 1) / sqrt(D)
    weight = (jax.random.normal(k_w, (C, D), dtype=jnp.float32)
              * lsk / (1.0 - lsk * lsk) * (D - 1) / math.sqrt(D))
    parameters = jax.random.normal(k_p, (B, D), dtype=jnp.float32)

    # Concentration used by the approximate sampler (same scale as the init kappa).
    kappa = lsk * (D - 1) / (1.0 - lsk * lsk)

    logits = vmf_classifier_forward(parameters, weight, initial_log_scale,
                                    sample_size=K, kappa=kappa, seed=0)
    logits = jax.block_until_ready(logits)

    assert logits.shape == (B, C)
    assert bool(jnp.all(jnp.isfinite(logits)))
    # logits are log-probabilities over classes: rows must (log)sum to ~0 / 1.
    row_lse = jnp.log(jnp.sum(jnp.exp(logits), axis=-1))
    assert bool(jnp.all(jnp.abs(row_lse) < 1e-3))
    print("KERNEL_OK")
</pallas_src>

<mosaic_0001>
module attributes {stable_mosaic.version = 11 : i64} {
  func.func @_vmf_logits_kernel(%arg0: i32, %arg1: memref<1xf32, #tpu.memory_space<smem>>, %arg2: memref<1xf32, #tpu.memory_space<smem>>, %arg3: memref<8x32xf32, #tpu.memory_space<vmem>>, %arg4: memref<8x8x32xf32, #tpu.memory_space<vmem>>, %arg5: memref<32x128xf32, #tpu.memory_space<vmem>>, %arg6: memref<1x128xf32, #tpu.memory_space<vmem>>, %arg7: memref<8x128xf32, #tpu.memory_space<vmem>>) attributes {dimension_semantics = [#tpu.dimension_semantics<parallel>], iteration_bounds = array<i64: 2>, scalar_prefetch = 0 : i64, scratch_operands = 0 : i64, tpu.core_type = #tpu.core_type<tc>, window_params = [{transform_indices = @transform_0, window_bounds = array<i64: 1>}, {transform_indices = @transform_1, window_bounds = array<i64: 1>}, {transform_indices = @transform_2, window_bounds = array<i64: 8, 32>}, {transform_indices = @transform_3, window_bounds = array<i64: 8, 8, 32>}, {pipeline_mode = #tpu.pipeline_mode<synchronous>, transform_indices = @transform_4, window_bounds = array<i64: 32, 128>}, {pipeline_mode = #tpu.pipeline_mode<synchronous>, transform_indices = @transform_5, window_bounds = array<i64: 1, 128>}, {transform_indices = @transform_6, window_bounds = array<i64: 8, 128>}]} {
    %c0 = arith.constant 0 : index
    %0 = memref.load %arg1[%c0] : memref<1xf32, #tpu.memory_space<smem>>
    %c0_0 = arith.constant 0 : index
    %1 = memref.load %arg2[%c0_0] : memref<1xf32, #tpu.memory_space<smem>>
    %c0_1 = arith.constant 0 : index
    %c0_2 = arith.constant 0 : index
    %2 = vector.load %arg3[%c0_1, %c0_2] : memref<8x32xf32, #tpu.memory_space<vmem>>, vector<8x32xf32>
    %3 = arith.mulf %2, %2 : vector<8x32xf32>
    %cst = arith.constant dense<0.000000e+00> : vector<8xf32>
    %4 = vector.multi_reduction <add>, %3, %cst [1] : vector<8x32xf32> to vector<8xf32>
    %5 = vector.shape_cast %4 : vector<8xf32> to vector<8x1xf32>
    %cst_3 = arith.constant 1.000000e-24 : f32
    %6 = vector.broadcast %cst_3 : f32 to vector<8x1xf32>
    %7 = arith.maximumf %5, %6 : vector<8x1xf32>
    %8 = math.rsqrt %7 : vector<8x1xf32>
    %9 = vector.broadcast %8 : vector<8x1xf32> to vector<8x32xf32>
    %10 = arith.mulf %2, %9 : vector<8x32xf32>
    %11 = vector.shape_cast %10 : vector<8x32xf32> to vector<8x1x32xf32>
    %12 = vector.broadcast %1 : f32 to vector<8x1x32xf32>
    %13 = arith.mulf %12, %11 : vector<8x1x32xf32>
    %c0_4 = arith.constant 0 : index
    %c0_5 = arith.constant 0 : index
    %c0_6 = arith.constant 0 : index
    %14 = vector.load %arg4[%c0_4, %c0_5, %c0_6] : memref<8x8x32xf32, #tpu.memory_space<vmem>>, vector<8x8x32xf32>
    %15 = vector.broadcast %13 : vector<8x1x32xf32> to vector<8x8x32xf32>
    %16 = arith.addf %15, %14 : vector<8x8x32xf32>
    %17 = arith.mulf %16, %16 : vector<8x8x32xf32>
    %cst_7 = arith.constant dense<0.000000e+00> : vector<8x8xf32>
    %18 = vector.multi_reduction <add>, %17, %cst_7 [2] : vector<8x8x32xf32> to vector<8x8xf32>
    %19 = vector.shape_cast %18 : vector<8x8xf32> to vector<8x8x1xf32>
    %cst_8 = arith.constant 1.000000e-24 : f32
    %20 = vector.broadcast %cst_8 : f32 to vector<8x8x1xf32>
    %21 = arith.maximumf %19, %20 : vector<8x8x1xf32>
    %22 = math.rsqrt %21 : vector<8x8x1xf32>
    %23 = vector.shape_cast %16 : vector<8x8x32xf32> to vector<64x32xf32>
    %c0_9 = arith.constant 0 : index
    %c0_10 = arith.constant 0 : index
    %24 = vector.load %arg5[%c0_9, %c0_10] : memref<32x128xf32, #tpu.memory_space<vmem>>, vector<32x128xf32>
    %cst_11 = arith.constant dense<0.000000e+00> : vector<64x128xf32>
    %25 = tpu.matmul %23, %24, %cst_11 {dimension_numbers = #tpu.dot_dimension_numbers<[1], [0], [0], [1], [0, 0, 1, 1], [], []>} : vector<64x32xf32>, vector<32x128xf32>, vector<64x128xf32> -> vector<64x128xf32>
    %26 = vector.shape_cast %25 : vector<64x128xf32> to vector<8x8x128xf32>
    %27 = vector.broadcast %0 : f32 to vector<8x8x1xf32>
    %28 = arith.mulf %27, %22 : vector<8x8x1xf32>
    %29 = vector.broadcast %28 : vector<8x8x1xf32> to vector<8x8x128xf32>
    %30 = arith.mulf %26, %29 : vector<8x8x128xf32>
    %c0_12 = arith.constant 0 : index
    %c0_13 = arith.constant 0 : index
    %31 = vector.load %arg6[%c0_12, %c0_13] : memref<1x128xf32, #tpu.memory_space<vmem>>, vector<1x128xf32>
    %32 = vector.shape_cast %31 : vector<1x128xf32> to vector<1x1x128xf32>
    %33 = vector.broadcast %32 : vector<1x1x128xf32> to vector<8x8x128xf32>
    %34 = arith.addf %30, %33 : vector<8x8x128xf32>
    %cst_14 = arith.constant dense<0xFF800000> : vector<8x8xf32>
    %35 = vector.multi_reduction <maximumf>, %34, %cst_14 [2] : vector<8x8x128xf32> to vector<8x8xf32>
    %36 = vector.shape_cast %35 : vector<8x8xf32> to vector<8x8x1xf32>
    %37 = vector.broadcast %36 : vector<8x8x1xf32> to vector<8x8x128xf32>
    %38 = arith.subf %34, %37 : vector<8x8x128xf32>
    %39 = math.exp %38 : vector<8x8x128xf32>
    %cst_15 = arith.constant dense<0.000000e+00> : vector<8x8xf32>
    %40 = vector.multi_reduction <add>, %39, %cst_15 [2] : vector<8x8x128xf32> to vector<8x8xf32>
    %41 = vector.shape_cast %40 : vector<8x8xf32> to vector<8x8x1xf32>
    %cst_16 = arith.constant 1.000000e+00 : f32
    %42 = vector.broadcast %cst_16 : f32 to vector<8x8x1xf32>
    %43 = arith.divf %42, %41 : vector<8x8x1xf32>
    %44 = vector.broadcast %43 : vector<8x8x1xf32> to vector<8x8x128xf32>
    %45 = arith.mulf %39, %44 : vector<8x8x128xf32>
    %cst_17 = arith.constant dense<0.000000e+00> : vector<8x128xf32>
    %46 = vector.multi_reduction <add>, %45, %cst_17 [1] : vector<8x8x128xf32> to vector<8x128xf32>
    %cst_18 = arith.constant 1.250000e-01 : f32
    %47 = vector.broadcast %cst_18 : f32 to vector<8x128xf32>
    %48 = arith.mulf %46, %47 : vector<8x128xf32>
    %49 = math.log %48 : vector<8x128xf32>
    %c0_19 = arith.constant 0 : index
    %c0_20 = arith.constant 0 : index
    %50 = vector.load %arg7[%c0_19, %c0_20] : memref<8x128xf32, #tpu.memory_space<vmem>>, vector<8x128xf32>
    tpu.vector_store %arg7[%c0_19, %c0_20], %49 {strides = array<i32>} : memref<8x128xf32, #tpu.memory_space<vmem>>, vector<8x128xf32>,
    return
  }
  func.func @transform_0(%arg0: i32) -> i32 {
    %c0_i32 = arith.constant 0 : i32
    %c0_i32_0 = arith.constant 0 : i32
    return %c0_i32 : i32
  }
  func.func @transform_1(%arg0: i32) -> i32 {
    %c0_i32 = arith.constant 0 : i32
    %c0_i32_0 = arith.constant 0 : i32
    return %c0_i32 : i32
  }
  func.func @transform_2(%arg0: i32) -> (i32, i32) {
    %c0_i32 = arith.constant 0 : i32
    %c0_i32_0 = arith.constant 0 : i32
    return %arg0, %c0_i32 : i32, i32
  }
  func.func @transform_3(%arg0: i32) -> (i32, i32, i32) {
    %c0_i32 = arith.constant 0 : i32
    %c0_i32_0 = arith.constant 0 : i32
    %c0_i32_1 = arith.constant 0 : i32
    return %arg0, %c0_i32, %c0_i32_0 : i32, i32, i32
  }
  func.func @transform_4(%arg0: i32) -> (i32, i32) {
    %c0_i32 = arith.constant 0 : i32
    %c0_i32_0 = arith.constant 0 : i32
    %c0_i32_1 = arith.constant 0 : i32
    return %c0_i32, %c0_i32_0 : i32, i32
  }
  func.func @transform_5(%arg0: i32) -> (i32, i32) {
    %c0_i32 = arith.constant 0 : i32
    %c0_i32_0 = arith.constant 0 : i32
    %c0_i32_1 = arith.constant 0 : i32
    return %c0_i32, %c0_i32_0 : i32, i32
  }
  func.func @transform_6(%arg0: i32) -> (i32, i32) {
    %c0_i32 = arith.constant 0 : i32
    %c0_i32_0 = arith.constant 0 : i32
    return %arg0, %c0_i32 : i32, i32
  }
}

</mosaic_0001>

<bundles_post_ra>
// kernel: tpu_custom_call.1
= control target key start
LH: loop header
LB: loop body
LE: loop exit
PB: predicated region body
PF: predicated region fallthrough
CT: control target
= control target key end

     0   :  { %s1622_s0 = inlined_call_operand.<no memory space> [shape: f32[1], index: 0, kind: input, shape index: {}]   ;;  %s1623_s1 = inlined_call_operand.<no memory space> [shape: f32[1], index: 1, kind: input, shape index: {}]   ;;  %s1624_s2 = inlined_call_operand.hbm [shape: f32[16,32], index: 2, kind: input, shape index: {}]   ;;  %s1625_s3 = inlined_call_operand.hbm [shape: f32[16,8,32], index: 3, kind: input, shape index: {}]   ;;  %s1626_s4 = inlined_call_operand.hbm [shape: f32[32,128], index: 4, kind: input, shape index: {}]   ;;  %s1627_s5 = inlined_call_operand.vmem [shape: f32[1,128], index: 5, kind: input, shape index: {}]   ;;  %s1628_s6 = inlined_call_operand.hbm [shape: f32[16,128], index: 6, kind: output, shape index: {}]  }
   0x1   :  { %11 = sst [smem:[#allocation2]] %s1622_s0 }
   0x2   :  { %12 = sst [smem:[#allocation3]] %s1623_s1 }
   0x3   :  { %13 = vsyncpa [#allocation5], 0 }
   0x4   :  { %15 = vsyncpa [#allocation5 + $0x1], 0 }
   0x5   :  { %16 = vsyncpa [#allocation8], 0 }
   0x6   :  { %18 = vsyncpa [#allocation8 + $0x1], 0 }
   0x7   :  { %19 = vsyncpa [#allocation6], 0 }
   0x8   :  { %21 = vsyncpa [#allocation6 + $0x1], 0  ;;  %s1374_s25 = smov 0   ;;  %s1376_s26 = smov 0  }
   0x9   :  { %s1378_s27 = smov 0   ;;  %s1380_s28 = smov 0  }
   0xa LB: > { %s1395_s0 = sadd.s32 4294967295, %s1324_s28   ;;  %s971_s1 = sadd.s32 4294967294, %s1324_s28   ;;  %s1324_s28 = sphi %s1380_s28, %s1652_s28   ;;  %s1320_s27 = sphi %s1378_s27, %s1651_s27   ;;  %s1316_s26 = sphi %s1376_s26, %s1650_s26   ;;  %s1312_s25 = sphi %s1374_s25, %s1649_s25  }
   0xb   : > { %p89_p0 = scmp.ne.s32.totalorder %s1316_s26, %s1312_s25  ;;  %p1629_p1 = scmp.eq.s32.totalorder %s1395_s0, 0 }
   0xc   : > { %p187_p3 = scmp.eq.s32.totalorder %s971_s1, 1  ;;  %p972_p5 = scmp.ge.s32.totalorder %s1324_s28, 1 }
   0xd   : > { %p1404_p4 = por %p1629_p1, %p89_p0  ;;  %p194_p7 = scmp.lt.s32.totalorder %s1324_s28, 3 }
   0xe   : > { %p1409_p6 = por %p187_p3, %p89_p0  ;;  %s1326_s8 = smov [#allocation9]  }
   0xf   : > { %s1634_s29 = scalar_select %p1404_p4, 1, 0 }
  0x10   : > { %s1635_s30 = scalar_select %p1409_p6, 1, 0 }
  0x11   : > { %p1414_p8 = pnand %p972_p5, %p194_p7  ;;  %s212_s9 = sshll.u32 %s1326_s8, 4  ;;  %s213_s9 = int_to_ptr.vmem [resolvable:$true] %s212_s9 }
  0x12   : > { %s1428_s11 = sadd.s32 1, %s1324_s28   ;;  %s76_s12 = sadd.s32 1, %s1320_s27 }
  0x13   : > { %s1636_s7 = scalar_select %p1414_p8, 1, 0 }
  0x14   : > { %p1049_p9 = pneg %p1414_p8  ;;  %s73_s13 = ssub.s32 %s1324_s28, %s1428_s11 }
  0x15   : > { %s1181_s14 = scalar_lea.vmem %s213_s9, 512  ;;  %p1189_p5 = scmp.lt.s32.totalorder %s213_s9, %s213_s9 }
  0x16   : > { %p1423_p11 = pnand %p1049_p9, %p1629_p1  ;;  %p1182_p13 = scmp.ne.s32.totalorder %s213_s9, %s1181_s14 }
  0x17   : > { %p1190_p7 = scmp.lt.s32.totalorder %s1181_s14, %s1181_s14 }
  0x18   : > { %p1172_p12 = pneg %p1423_p11 }
  0x19   : > { %p1191_p10 = por %p1190_p7, %p1189_p5 }
  0x1a   : > { %p1184_p0 = pnand %p1182_p13, %p1172_p12 }
  0x1c   : > { %p1185_p3 = pneg %p1184_p0 }
  0x1e   : > { %p1192_p2 = pnand %p1191_p10, %p1185_p3 }
  0x20   : > { %1195 = shalt.err (!%p1192_p2)
}
  0x21   : > { %s1630_s15 = smov 128   ;;  %s1328_s16 = smov 8  }
  0x22   : > { %1052 = dma.hbm_to_vmem [thread:$0]  (!%p1423_p11), %s1626_s4, 512, %s213_s9, [#allocation8], %s1630_s15, %s1630_s15, %s1328_s16  }
  0x23   : > { %p74_p2 = scmp.eq.s32.totalorder %s73_s13, 0  ;;  %p83_p9 = scmp.ne.s32.totalorder %s1320_s27, %s1316_s26 }
  0x24   : > { %p84_p10 = scmp.eq.s32.totalorder %s1324_s28, 0  ;;  %p1065_p12 = scmp.lt.s32.totalorder %s1324_s28, 2 }
  0x25   : > { %s1448_s19 = scalar_select %p74_p2, %s1320_s27, %s76_s12  }
  0x26   : > { %p85_p13 = por %p84_p10, %p83_p9  ;;  %p1638_p0 = scmp.eq.s32.totalorder %s1395_s0, 1 }
  0x27   : > { %s1457_s21 = sand.u32 1, %s1320_s27   ;;  %s976_s22 = sshll.u32 %s1324_s28, 7 }
  0x28   : > { %p1452_p3 = por %p1638_p0, %p83_p9  ;;  %s975_s23 = sshll.u32 %s1457_s21, 3 }
  0x29   : > { %s1464_s8 = scalar_lea.hbm %s1624_s2, %s976_s22  ;;  %s233_s9 = scalar_lea.vmem [#allocation4], %s975_s23 }
  0x2a   : > { %s1639_s20 = scalar_select %p1452_p3, 1, 0 }
  0x2b   : > { %s240_s10 = sshll.u32 %s233_s9, 4  ;;  %p1466_p11 = pnand %p1065_p12, %p85_p13  ;;  %s241_s10 = int_to_ptr.vmem [resolvable:$true] %s240_s10 }
  0x2c   : > { %s977_s13 = sshll.u32 %s1457_s21, 6  ;;  %s230_s14 = scalar_lea.sflag [#allocation5], %s1457_s21 }
  0x2d   : > { %s1196_s17 = scalar_lea.hbm %s1464_s8, 128  ;;  %p1198_p7 = pneg %p1466_p11 }
  0x2e   : > { %p1197_p5 = scmp.ne.s32.totalorder %s1464_s8, %s1196_s17  ;;  %s1201_s23 = scalar_lea.hbm %s1624_s2, 256 }
  0x2f   : > { %p1202_p10 = scmp.lt.s32.totalorder %s1464_s8, %s1624_s2  ;;  %p1203_p12 = scmp.lt.s32.totalorder %s1201_s23, %s1196_s17 }
  0x30   : > { %p1199_p2 = pnand %p1198_p7, %p1197_p5 }
  0x31   : > { %p1204_p13 = por %p1203_p12, %p1202_p10 }
  0x32   : > { %p1200_p9 = pneg %p1199_p2 }
  0x34   : > { %p1205_p0 = pnand %p1204_p13, %p1200_p9 }
  0x36   : > { %1208 = shalt.err (!%p1205_p0)
}
  0x37   : > { %s1209_s21 = scalar_lea.vmem %s241_s10, 128  ;;  %s1329_s9 = smov [#allocation4]  }
  0x38   : > { %p1210_p1 = scmp.ne.s32.totalorder %s241_s10, %s1209_s21  ;;  %s1214_s15 = sshll.u32 %s1329_s9, 4  ;;  %s1215_s15 = int_to_ptr.vmem [resolvable:$false] %s1214_s15 }
  0x39   : > { %s1216_s18 = scalar_lea.vmem %s1215_s15, 256  ;;  %p1217_p2 = scmp.lt.s32.totalorder %s241_s10, %s1215_s15 }
  0x3a   : > { %p1212_p6 = pnand %p1210_p1, %p1198_p7  ;;  %p1218_p3 = scmp.lt.s32.totalorder %s1216_s18, %s1209_s21 }
  0x3c   : > { %p1213_p5 = pneg %p1212_p6  ;;  %p1219_p4 = por %p1218_p3, %p1217_p2 }
  0x3e   : > { %p1220_p8 = pnand %p1219_p4, %p1213_p5 }
  0x40   : > { %1223 = shalt.err (!%p1220_p8)
}
  0x41   : > { %1056 = dma.hbm_to_vmem [thread:$0]  (!%p1466_p11), %s1464_s8, 128, %s241_s10, %s230_s14  }
  0x42   : > { %s251_s17 = scalar_lea.vmem [#allocation7], %s977_s13  ;;  %s247_s23 = sand.u32 1, %s1324_s28  }
  0x43   : > { %s258_s22 = sshll.u32 %s251_s17, 4  ;;  %s998_s24 = sshll.u32 %s1324_s28, 10  ;;  %s1493_s22 = int_to_ptr.vmem [resolvable:$true] %s258_s22 }
  0x44   : > { %s1499_s15 = scalar_lea.hbm %s1625_s3, %s998_s24  ;;  %s248_s21 = scalar_lea.sflag [#allocation8], %s247_s23 }
  0x45   : > { %s1224_s18 = scalar_lea.hbm %s1499_s15, 1024  ;;  %s1229_s13 = scalar_lea.hbm %s1625_s3, 2048 }
  0x46   : > { %p1225_p1 = scmp.ne.s32.totalorder %s1499_s15, %s1224_s18  ;;  %p1230_p8 = scmp.lt.s32.totalorder %s1499_s15, %s1625_s3 }
  0x47   : > { %p1231_p3 = scmp.lt.s32.totalorder %s1229_s13, %s1224_s18 }
  0x48   : > { %p1227_p4 = pnand %p1225_p1, %p1198_p7 }
  0x49   : > { %p1232_p9 = por %p1231_p3, %p1230_p8 }
  0x4a   : > { %p1228_p6 = pneg %p1227_p4 }
  0x4c   : > { %p1233_p10 = pnand %p1232_p9, %p1228_p6 }
  0x4e   : > { %1236 = shalt.err (!%p1233_p10)
}
  0x4f   : > { %s1237_s23 = scalar_lea.vmem %s1493_s22, 1024  ;;  %s1330_s24 = smov [#allocation7]  }
  0x50   : > { %p1238_p12 = scmp.ne.s32.totalorder %s1493_s22, %s1237_s23  ;;  %s1242_s1 = sshll.u32 %s1330_s24, 4  ;;  %s1243_s1 = int_to_ptr.vmem [resolvable:$false] %s1242_s1 }
  0x51   : > { %s1244_s9 = scalar_lea.vmem %s1243_s1, 2048  ;;  %p1245_p5 = scmp.lt.s32.totalorder %s1493_s22, %s1243_s1 }
  0x52   : > { %p1240_p13 = pnand %p1238_p12, %p1198_p7  ;;  %p1246_p2 = scmp.lt.s32.totalorder %s1244_s9, %s1237_s23 }
  0x54   : > { %p1241_p0 = pneg %p1240_p13  ;;  %p1247_p1 = por %p1246_p2, %p1245_p5 }
  0x56   : > { %p1248_p4 = pnand %p1247_p1, %p1241_p0 }
  0x58   : > { %1251 = shalt.err (!%p1248_p4)
}
  0x59   : > { %s1641_s18 = smov 128   ;;  %p1642_p7 = scmp.ne.s32.totalorder %s1636_s7, 0 }
  0x5a   : > { %1059 = dma.hbm_to_vmem [thread:$0]  (!%p1466_p11), %s1499_s15, 1024, %s1493_s22, %s248_s21, %s1641_s18, %s1641_s18, %s1328_s16  }
  0x5b   : > { %270 = sbr.rel (%p1642_p7) target bundleno = 841 (0x349), region = 44  ;;  %s1529_s8 = sand.u32 (!%p1642_p7), 1, %s1316_s26  }
  0x5c   : > { %s981_s10 = sshll.u32 (!%p1642_p7), %s1529_s8, 3  ;;  %s273_s13 = scalar_lea.sflag (!%p1642_p7), [#allocation5], %s1529_s8 }
  0x5d   : > { %s276_s12 = scalar_lea.vmem (!%p1642_p7), [#allocation4], %s981_s10  ;;  %p1643_p6 = scmp.ne.s32.totalorder (!%p1642_p7), %s1634_s29, 0 }
  0x60   : > { %1295 = dma.done.wait (%p1643_p6), %s273_s13, 128  }
  0x61   : > { %1297 = vsyncadd (%p1643_p6), %s273_s13, 4294967168  ;;  %s281_s7 = sand.u32 1, %s1395_s0   ;;  %s982_s16 = sshll.u32 %s1529_s8, 6 }
  0x62   : > { %s282_s22 = scalar_lea.sflag [#allocation8], %s281_s7  ;;  %s1541_s15 = scalar_lea.vmem [#allocation7], %s982_s16 }
  0x63   : > { %1299 = dma.done.wait (%p1643_p6), %s282_s22, 1024  }
  0x64   : > { %1301 = vsyncadd (%p1643_p6), %s282_s22, 4294966272  ;;  %p1644_p11 = scmp.eq.s32.totalorder %s1395_s0, 0 }
  0x66   : > { %1303 = dma.done.wait (%p1644_p11), [#allocation8], 512   ;;  %p1645_p8 = pmov %p1644_p11 }
  0x67   : > { %v326_v0 = vld [vmem:[%s276_s12] sm:$0xff]  ;;  %vm328_vm0 = vcmask 261120   ;;  %v515_v5 = vld [vmem:[#allocation9 + $0x8] sm:$0xff]  ;;  %v514_v6 = vld [vmem:[#allocation9] sm:$0xff]  ;;  %v1331_v9 = vmov 1966171168   ;;  %v340_v11 = vlaneseq }
  0x68   : > { %1305 = vsyncadd (%p1645_p8), [#allocation8], 4294966784  ;;  %v327_v1 = vmul.f32 %v326_v0, %v326_v0  ;;  %v517_v3 = vld [vmem:[#allocation9 + $0x18] sm:$0xff]  ;;  %v516_v4 = vld [vmem:[#allocation9 + $0x10] sm:$0xff]  ;;  %v338_v10 = vunpack.c.l.s4 %v1331_v9  ;;  %s325_s29 = sld [smem:[#allocation3]]  ;;  %vm839_vm1 = vcmask 1041409  }
  0x69   : > { %1011 = vmatprep.subr.mxu0 %v517_v3  ;;  %1031 = vmatprep.subr.mxu1 %v517_v3  ;;  %v341_v13 = vshrl.u32 %v340_v11, 7  ;;  %v402_v28 = vld [vmem:[%s1541_s15] sm:$0xff]  ;;  %v403_v34 = vld [vmem:[%s1541_s15 + $0x8] sm:$0xff]  ;;  %v404_v37 = vld [vmem:[%s1541_s15 + $0x10] sm:$0xff]  ;;  %s324_s21 = sld [smem:[#allocation2]]  ;;  %vm841_vm2 = vcmask 1042434  }
  0x6a   : > { %v329_v2 = vsel %vm328_vm0, %v327_v1, 0.0  ;;  %1012 = vmatpush3.msra.mxu0 %v517_v3  ;;  %1035 = vmatpush3.msra.mxu1 %v517_v3  ;;  %v339_v12 = vunpack.c.0.s8 %v338_v10  ;;  %v406_v41 = vld [vmem:[%s1541_s15 + $0x20] sm:$0xff]  ;;  %v407_v45 = vld [vmem:[%s1541_s15 + $0x28] sm:$0xff]  ;;  %v408_v53 = vld [vmem:[%s1541_s15 + $0x30] sm:$0xff]  ;;  %vm843_vm3 = vcmask 1043459   ;;  %vm845_vm4 = vcmask 1044484  }
  0x6b   : > { %330 = vadd.xlane.f32.xlu0 %v329_v2  ;;  %1013 = vmatprep.subr.mxu0 %v516_v4  ;;  %v420_v22 = vsub.s32 0, %v341_v13  ;;  %v405_v54 = vld [vmem:[%s1541_s15 + $0x18] sm:$0xff]  ;;  %vm847_vm5 = vcmask 1045509   ;;  %vm849_vm6 = vcmask 1046534   ;;  %s995_s23 = sshll.u32 %s1395_s0, 7  ;;  %s322_s24 = scalar_lea.vmem [#allocation10], %s981_s10 }
  0x6c   : > { %1032 = vmatprep.subr.mxu1 %v516_v4  ;;  %1014 = vmatpush3.msra.mxu0 %v516_v4  ;;  %v342_v14 = vsub.s32 %v339_v12, %v341_v13  ;;  %s869_s1 = sshll.u32 %s322_s24, 4  ;;  %vm851_vm7 = vcmask 1047559   ;;  %s1585_s13 = scalar_lea.hbm %s1628_s6, %s995_s23  ;;  %s870_s1 = int_to_ptr.vmem [resolvable:$true] %s869_s1 }
  0x6d   : > { %1036 = vmatpush3.msra.mxu1 %v516_v4  ;;  %1015 = vmatprep.subr.mxu0 %v515_v5  ;;  %s856_s12 = scalar_lea.sflag [#allocation6], %s1529_s8  ;;  %s1252_s0 = scalar_lea.vmem %s870_s1, 128 }
  0x6e   : > { %1033 = vmatprep.subr.mxu1 %v515_v5  ;;  %1016 = vmatpush3.msra.mxu0 %v515_v5  ;;  %v393_v19 = vstv %s325_s29  ;;  %p1253_p3 = scmp.ne.s32.totalorder %s870_s1, %s1252_s0  ;;  %p1646_p9 = scmp.ne.s32.totalorder %s1639_s20, 0 }
  0x6f   : > { %1037 = vmatpush3.msra.mxu1 %v515_v5  ;;  %1017 = vmatprep.subr.mxu0 %v514_v6  ;;  %s1332_s10 = smov [#allocation10]  }
  0x70   : > { %1034 = vmatprep.subr.mxu1 %v514_v6  ;;  %1018 = vmatpush3.msra.mxu0 %v514_v6  ;;  %p1254_p10 = pnand %p1253_p3, %p1646_p9  ;;  %s1256_s7 = sshll.u32 %s1332_s10, 4  ;;  %s1257_s7 = int_to_ptr.vmem [resolvable:$false] %s1256_s7 }
  0x71   : > { %1038 = vmatpush3.msra.mxu1 %v514_v6  ;;  %s1258_s16 = scalar_lea.vmem %s1257_s7, 256  ;;  %p1259_p13 = scmp.lt.s32.totalorder %s870_s1, %s1257_s7 }
  0x72   : > { %p1255_p12 = pneg %p1254_p10  ;;  %p1260_p0 = scmp.lt.s32.totalorder %s1258_s16, %s1252_s0 }
  0x74   : > { %p1261_p5 = por %p1260_p0, %p1259_p13 }
  0x76   : > { %p1262_p2 = pnand %p1261_p5, %p1255_p12 }
  0xf4   : > { %v331_v7 = vpop.xlane.xlu0 %330 }
  0xf5   : > { %v332_v8 = vmax.f32 %v331_v7, 1e-24 }
  0xf7   : > { %1104 = vrsqrt.f32 %v332_v8 }
 0x104   : > { %v1105_v15 = vpop.eup %1104 }
 0x105   : > { %v334_v16 = vmul.f32 %v1105_v15, %v326_v0  ;;  %v409_v0 = vld [vmem:[%s1541_s15 + $0x38] sm:$0xff] }
 0x107   : > { %v343_v17 = vrot.slane %v334_v16, %v342_v14  ;;  %v336_v18 = vcombine.high %v334_v16, %v334_v16 }
 0x109   : > { %v351_v20 = vcombine.high %v343_v17, %v343_v17  ;;  %v359_v21 = vrot.slane %v343_v17, %v342_v14  ;;  %v350_v23 = vrot.slane %v336_v18, %v342_v14 }
 0x10b   : > { %v381_v24 = vcombine.high %v359_v21, %v359_v21  ;;  %v394_v25 = vmul.f32 %v393_v19, %v359_v21  ;;  %v373_v26 = vrot.slane %v351_v20, %v342_v14  ;;  %v352_v27 = vcombine.high %v350_v23, %v350_v23 }
 0x10c   : > { %v366_v29 = vrot.slane %v350_v23, %v342_v14 }
 0x10d   : > { %v421_v30 = vrot.slane %v394_v25, %v420_v22  ;;  %v395_v31 = vmul.f32 %v393_v19, %v373_v26  ;;  %v396_v32 = vmul.f32 %v393_v19, %v381_v24  ;;  %v380_v33 = vrot.slane %v352_v27, %v342_v14 }
 0x10e   : > { %v382_v35 = vcombine.high %v366_v29, %v366_v29  ;;  %v398_v36 = vmul.f32 %v393_v19, %v366_v29  ;;  %v383_v38 = vcombine.high %v373_v26, %v373_v26 }
 0x10f   : > { %v458_v39 = vadd.f32 %v421_v30, %v402_v28  ;;  %v425_v40 = vrot.slane %v395_v31, %v420_v22  ;;  %v429_v42 = vrot.slane %v396_v32, %v420_v22  ;;  %v399_v43 = vmul.f32 %v393_v19, %v380_v33 }
 0x110   : > { %v437_v44 = vrot.slane %v398_v36, %v420_v22  ;;  %v400_v46 = vmul.f32 %v393_v19, %v382_v35  ;;  %v397_v47 = vmul.f32 %v393_v19, %v383_v38  ;;  %v384_v48 = vcombine.high %v380_v33, %v380_v33 }
 0x111   : > { %1019 = vmatprep.mubr.msk.f32.mxu0 %vm328_vm0, %v458_v39  ;;  %v459_v49 = vadd.f32 %v425_v40, %v403_v34  ;;  %v460_v50 = vadd.f32 %v429_v42, %v404_v37  ;;  %v466_v51 = vmul.f32 %v458_v39, %v458_v39  ;;  %v441_v52 = vrot.slane %v399_v43, %v420_v22  ;;  %v993_v39 = vld [vmem:[%s1627_s5] ss:$0 sm:$0xff] }
 0x112   : > { %v462_v55 = vadd.f32 %v437_v44, %v406_v41  ;;  %v445_v56 = vrot.slane %v400_v46, %v420_v22  ;;  %v433_v57 = vrot.slane %v397_v47, %v420_v22  ;;  %v401_v58 = vmul.f32 %v393_v19, %v384_v48 }
 0x113   : > { %1020 = vmatmul.mubr.msk.f32.vlgmr.msra.gmra.mxu0 %vm328_vm0, %v459_v49  ;;  %v474_v59 = vsel %vm328_vm0, %v466_v51, 0.0  ;;  %v463_v60 = vadd.f32 %v441_v52, %v407_v45  ;;  %v467_v61 = vmul.f32 %v459_v49, %v459_v49  ;;  %v468_v3 = vmul.f32 %v460_v50, %v460_v50 }
 0x114   : > { %1025 = vmatprep.mubr.msk.f32.mxu1 %vm328_vm0, %v462_v55  ;;  %1022 = vmatprep.mubr.msk.f32.mxu0 %vm328_vm0, %v460_v50  ;;  %v464_v62 = vadd.f32 %v445_v56, %v408_v53  ;;  %v461_v63 = vadd.f32 %v433_v57, %v405_v54  ;;  %v449_v1 = vrot.slane %v401_v58, %v420_v22  ;;  %v647_v35 = vstv %s324_s21 }
 0x115   : > { %475 = vadd.xlane.f32.xlu0 %v474_v59  ;;  %1026 = vmatmul.mubr.msk.f32.vlgmr.msra.gmra.mxu1 %vm328_vm0, %v463_v60  ;;  %v477_v2 = vsel %vm328_vm0, %v467_v61, 0.0  ;;  %v471_v7 = vmul.f32 %v463_v60, %v463_v60  ;;  %v480_v8 = vsel %vm328_vm0, %v468_v3, 0.0  ;;  %v470_v9 = vmul.f32 %v462_v55, %v462_v55 }
 0x116   : > { %1028 = vmatprep.mubr.msk.f32.mxu1 %vm328_vm0, %v464_v62  ;;  %478 = vadd.xlane.f32.xlu1 %v477_v2  ;;  %v469_v4 = vmul.f32 %v461_v63, %v461_v63  ;;  %v465_v5 = vadd.f32 %v449_v1, %v409_v0  ;;  %v472_v13 = vmul.f32 %v464_v62, %v464_v62 }
 0x117   : > { %1023 = vmatmul.mubr.msk.f32.gmra.mxu0 %vm328_vm0, %v461_v63  ;;  %v489_v10 = vsel %vm328_vm0, %v471_v7, 0.0  ;;  %v486_v12 = vsel %vm328_vm0, %v470_v9, 0.0 }
 0x118   : > { %v483_v6 = vsel %vm328_vm0, %v469_v4, 0.0  ;;  %v473_v11 = vmul.f32 %v465_v5, %v465_v5  ;;  %v492_v15 = vsel %vm328_vm0, %v472_v13, 0.0 }
 0x119   : > { %484 = vadd.xlane.f32.xlu0 %v483_v6  ;;  %1029 = vmatmul.mubr.msk.f32.gmra.mxu1 %vm328_vm0, %v465_v5 }
 0x11a   : > { %481 = vadd.xlane.f32.xlu1 %v480_v8  ;;  %v495_v14 = vsel %vm328_vm0, %v473_v11, 0.0 }
 0x11d   : > { %490 = vadd.xlane.f32.xlu0 %v489_v10 }
 0x11e   : > { %487 = vadd.xlane.f32.xlu1 %v486_v12 }
 0x121   : > { %496 = vadd.xlane.f32.xlu0 %v495_v14 }
 0x122   : > { %493 = vadd.xlane.f32.xlu1 %v492_v15 }
 0x19e   : > { %v476_v16 = vpop.xlane.xlu0 %475 }
 0x19f   : > { %v479_v17 = vpop.xlane.xlu1 %478  ;;  %v498_v22 = vmax.f32 %v476_v16, 1e-24 }
 0x1a0   : > { %v499_v21 = vmax.f32 %v479_v17, 1e-24 }
 0x1a2   : > { %v485_v18 = vpop.xlane.xlu0 %484  ;;  %1106 = vrsqrt.f32 %v499_v21 }
 0x1a3   : > { %v482_v19 = vpop.xlane.xlu1 %481  ;;  %1108 = vrsqrt.f32 %v498_v22  ;;  %v501_v26 = vmax.f32 %v485_v18, 1e-24 }
 0x1a4   : > { %v500_v28 = vmax.f32 %v482_v19, 1e-24 }
 0x1a6   : > { %v491_v20 = vpop.xlane.xlu0 %490 }
 0x1a7   : > { %v488_v23 = vpop.xlane.xlu1 %487  ;;  %v503_v24 = vmax.f32 %v491_v20, 1e-24 }
 0x1a8   : > { %v502_v25 = vmax.f32 %v488_v23, 1e-24 }
 0x1a9   : > { %1110 = vrsqrt.f32 %v503_v24 }
 0x1aa   : > { %v497_v27 = vpop.xlane.xlu0 %496  ;;  %1112 = vrsqrt.f32 %v502_v25 }
 0x1ab   : > { %v494_v29 = vpop.xlane.xlu1 %493  ;;  %1114 = vrsqrt.f32 %v501_v26  ;;  %v505_v30 = vmax.f32 %v497_v27, 1e-24 }
 0x1ac   : > { %1116 = vrsqrt.f32 %v500_v28  ;;  %v504_v31 = vmax.f32 %v494_v29, 1e-24 }
 0x1ad   : > { %1118 = vrsqrt.f32 %v505_v30 }
 0x1ae   : > { %1120 = vrsqrt.f32 %v504_v31 }
 0x1af   : > { %v1107_v32 = vpop.eup %1106 }
 0x1b0   : > { %v1109_v33 = vpop.eup %1108  ;;  %v649_v36 = vmul.f32 %v1107_v32, %v647_v35 }
 0x1b1   : > { %v648_v41 = vmul.f32 %v1109_v33, %v647_v35 }
 0x1b6   : > { %v1111_v34 = vpop.eup %1110 }
 0x1b7   : > { %v1113_v37 = vpop.eup %1112  ;;  %v653_v42 = vmul.f32 %v1111_v34, %v647_v35 }
 0x1b8   : > { %v1115_v43 = vpop.eup %1114  ;;  %v652_v48 = vmul.f32 %v1113_v37, %v647_v35 }
 0x1b9   : > { %v1117_v50 = vpop.eup %1116  ;;  %v651_v53 = vmul.f32 %v1115_v43, %v647_v35 }
 0x1ba   : > { %v1119_v56 = vpop.eup %1118  ;;  %v650_v60 = vmul.f32 %v1117_v50, %v647_v35 }
 0x1bb   : > { %v1121_v62 = vpop.eup %1120  ;;  %v655_v0 = vmul.f32 %v1119_v56, %v647_v35 }
 0x1bc   : > { %v654_v4 = vmul.f32 %v1121_v62, %v647_v35 }
 0x1d3   : > { %v1021_v38 = vpop.f32.mrf.mxu0 }
 0x1d4   : > { %v657_v40 = vmul.f32 %v1021_v38, %v649_v36 }
 0x1d5   : > { %v608_v44 = vpop.f32.mrf.mxu0  ;;  %v1027_v45 = vpop.f32.mrf.mxu1 }
 0x1d6   : > { %v656_v46 = vmul.f32 %v648_v41, %v608_v44  ;;  %v661_v47 = vmul.f32 %v1027_v45, %v653_v42  ;;  %v672_v49 = vadd.f32 %v993_v39, %v657_v40 }
 0x1d7   : > { %v1024_v51 = vpop.f32.mrf.mxu0  ;;  %v628_v52 = vpop.f32.mrf.mxu1 }
 0x1d8   : > { %v660_v54 = vmul.f32 %v652_v48, %v628_v52  ;;  %681 = vmax.xlane.f32.xlu0 %v672_v49  ;;  %v671_v55 = vadd.f32 %v993_v39, %v656_v46  ;;  %v659_v59 = vmul.f32 %v1024_v51, %v651_v53  ;;  %v676_v61 = vadd.f32 %v993_v39, %v661_v47 }
 0x1d9   : > { %v618_v57 = vpop.f32.mrf.mxu0  ;;  %v1030_v58 = vpop.f32.mrf.mxu1 }
 0x1da   : > { %679 = vmax.xlane.f32.xlu1 %v671_v55  ;;  %v658_v63 = vmul.f32 %v650_v60, %v618_v57  ;;  %v675_v1 = vadd.f32 %v993_v39, %v660_v54  ;;  %v663_v3 = vmul.f32 %v1030_v58, %v655_v0  ;;  %v674_v5 = vadd.f32 %v993_v39, %v659_v59 }
 0x1db   : > { %v638_v2 = vpop.f32.mrf.mxu1 }
 0x1dc   : > { %689 = vmax.xlane.f32.xlu0 %v676_v61  ;;  %v662_v6 = vmul.f32 %v654_v4, %v638_v2  ;;  %v673_v7 = vadd.f32 %v993_v39, %v658_v63  ;;  %v678_v8 = vadd.f32 %v993_v39, %v663_v3 }
 0x1de   : > { %687 = vmax.xlane.f32.xlu1 %v675_v1  ;;  %v677_v9 = vadd.f32 %v993_v39, %v662_v6 }
 0x1e0   : > { %685 = vmax.xlane.f32.xlu0 %v674_v5 }
 0x1e2   : > { %683 = vmax.xlane.f32.xlu1 %v673_v7 }
 0x1e4   : > { %693 = vmax.xlane.f32.xlu0 %v678_v8 }
 0x1e6   : > { %691 = vmax.xlane.f32.xlu1 %v677_v9 }
 0x261   : > { %v682_v10 = vpop.xlane.xlu0 %681 }
 0x262   : > { %v696_v11 = vsub.f32 %v672_v49, %v682_v10 }
 0x263   : > { %v680_v12 = vpop.xlane.xlu1 %679 }
 0x264   : > { %v705_v13 = vmul.f32 1.442695, %v696_v11  ;;  %v695_v14 = vsub.f32 %v671_v55, %v680_v12 }
 0x265   : > { %v690_v15 = vpop.xlane.xlu0 %689 }
 0x266   : > { %1122 = vpow2.f32 %v705_v13  ;;  %v703_v16 = vmul.f32 1.442695, %v695_v14  ;;  %v700_v17 = vsub.f32 %v676_v61, %v690_v15 }
 0x267   : > { %v688_v18 = vpop.xlane.xlu1 %687 }
 0x268   : > { %1124 = vpow2.f32 %v703_v16  ;;  %v713_v19 = vmul.f32 1.442695, %v700_v17  ;;  %v699_v20 = vsub.f32 %v675_v1, %v688_v18 }
 0x269   : > { %v686_v21 = vpop.xlane.xlu0 %685 }
 0x26a   : > { %1126 = vpow2.f32 %v713_v19  ;;  %v711_v22 = vmul.f32 1.442695, %v699_v20  ;;  %v698_v23 = vsub.f32 %v674_v5, %v686_v21 }
 0x26b   : > { %v684_v24 = vpop.xlane.xlu1 %683 }
 0x26c   : > { %1128 = vpow2.f32 %v711_v22  ;;  %v709_v25 = vmul.f32 1.442695, %v698_v23  ;;  %v697_v26 = vsub.f32 %v673_v7, %v684_v24 }
 0x26d   : > { %v694_v27 = vpop.xlane.xlu0 %693 }
 0x26e   : > { %1130 = vpow2.f32 %v709_v25  ;;  %v707_v28 = vmul.f32 1.442695, %v697_v26  ;;  %v702_v29 = vsub.f32 %v678_v8, %v694_v27 }
 0x26f   : > { %v692_v30 = vpop.xlane.xlu1 %691 }
 0x270   : > { %1132 = vpow2.f32 %v707_v28  ;;  %v717_v31 = vmul.f32 1.442695, %v702_v29  ;;  %v701_v32 = vsub.f32 %v677_v9, %v692_v30 }
 0x272   : > { %1134 = vpow2.f32 %v717_v31  ;;  %v715_v33 = vmul.f32 1.442695, %v701_v32 }
 0x273   : > { %v1123_v34 = vpop.eup %1122 }
 0x274   : > { %1136 = vpow2.f32 %v715_v33  ;;  %721 = vadd.xlane.f32.xlu0 %v1123_v34 }
 0x275   : > { %v1125_v35 = vpop.eup %1124 }
 0x276   : > { %719 = vadd.xlane.f32.xlu1 %v1125_v35 }
 0x277   : > { %v1127_v36 = vpop.eup %1126 }
 0x278   : > { %729 = vadd.xlane.f32.xlu0 %v1127_v36 }
 0x279   : > { %v1129_v37 = vpop.eup %1128 }
 0x27a   : > { %727 = vadd.xlane.f32.xlu1 %v1129_v37 }
 0x27b   : > { %v1131_v38 = vpop.eup %1130 }
 0x27c   : > { %725 = vadd.xlane.f32.xlu0 %v1131_v38 }
 0x27d   : > { %v1133_v39 = vpop.eup %1132 }
 0x27e   : > { %723 = vadd.xlane.f32.xlu1 %v1133_v39 }
 0x27f   : > { %v1135_v40 = vpop.eup %1134 }
 0x280   : > { %733 = vadd.xlane.f32.xlu0 %v1135_v40 }
 0x281   : > { %v1137_v41 = vpop.eup %1136 }
 0x282   : > { %731 = vadd.xlane.f32.xlu1 %v1137_v41 }
 0x2fd   : > { %v722_v42 = vpop.xlane.xlu0 %721 }
 0x2fe   : > { %1138 = vrcp.f32 %v722_v42 }
 0x2ff   : > { %v720_v43 = vpop.xlane.xlu1 %719 }
 0x300   : > { %1140 = vrcp.f32 %v720_v43 }
 0x301   : > { %v730_v44 = vpop.xlane.xlu0 %729 }
 0x302   : > { %1142 = vrcp.f32 %v730_v44 }
 0x303   : > { %v728_v45 = vpop.xlane.xlu1 %727 }
 0x304   : > { %1144 = vrcp.f32 %v728_v45 }
 0x305   : > { %v726_v46 = vpop.xlane.xlu0 %725 }
 0x306   : > { %1146 = vrcp.f32 %v726_v46 }
 0x307   : > { %v724_v47 = vpop.xlane.xlu1 %723 }
 0x308   : > { %1148 = vrcp.f32 %v724_v47 }
 0x309   : > { %v734_v48 = vpop.xlane.xlu0 %733 }
 0x30a   : > { %1150 = vrcp.f32 %v734_v48 }
 0x30b   : > { %v1139_v49 = vpop.eup %1138  ;;  %v732_v50 = vpop.xlane.xlu1 %731 }
 0x30c   : > { %v752_v51 = vmul.f32 %v1139_v49, %v1123_v34  ;;  %1152 = vrcp.f32 %v732_v50 }
 0x30d   : > { %v1141_v52 = vpop.eup %1140 }
 0x30e   : > { %v765_v53 = vrot.slane %v752_v51, 4  ;;  %v751_v54 = vmul.f32 %v1141_v52, %v1125_v35 }
 0x30f   : > { %v1143_v55 = vpop.eup %1142 }
 0x310   : > { %v766_v56 = vadd.f32 %v765_v53, %v752_v51  ;;  %v759_v57 = vrot.slane %v751_v54, 4  ;;  %v756_v58 = vmul.f32 %v1143_v55, %v1127_v36 }
 0x311   : > { %v1145_v59 = vpop.eup %1144 }
 0x312   : > { %v767_v60 = vrot.slane %v766_v56, 2  ;;  %v760_v61 = vadd.f32 %v759_v57, %v751_v54  ;;  %v789_v62 = vrot.slane %v756_v58, 4  ;;  %v755_v63 = vmul.f32 %v1145_v59, %v1129_v37 }
 0x313   : > { %v1147_v0 = vpop.eup %1146 }
 0x314   : > { %v768_v1 = vadd.f32 %v767_v60, %v766_v56  ;;  %v761_v2 = vrot.slane %v760_v61, 2  ;;  %v790_v3 = vadd.f32 %v789_v62, %v756_v58  ;;  %v783_v4 = vrot.slane %v755_v63, 4 }
 0x315   : > { %v1149_v5 = vpop.eup %1148  ;;  %v754_v6 = vmul.f32 %v1147_v0, %v1131_v38 }
 0x316   : > { %v762_v7 = vadd.f32 %v761_v2, %v760_v61  ;;  %v791_v8 = vrot.slane %v790_v3, 2  ;;  %v784_v9 = vadd.f32 %v783_v4, %v755_v63  ;;  %v753_v12 = vmul.f32 %v1149_v5, %v1133_v39 }
 0x317   : > { %v1151_v10 = vpop.eup %1150  ;;  %v777_v11 = vrot.slane %v754_v6, 4  ;;  %v769_v13 = vrot.slane %v768_v1, 1 }
 0x318   : > { %v763_v14 = vrot.slane %v762_v7, 1  ;;  %v792_v15 = vadd.f32 %v791_v8, %v790_v3  ;;  %v785_v16 = vrot.slane %v784_v9, 2  ;;  %v771_v19 = vrot.slane %v753_v12, 4 }
 0x319   : > { %v1153_v17 = vpop.eup %1152  ;;  %v778_v18 = vadd.f32 %v777_v11, %v754_v6  ;;  %v758_v20 = vmul.f32 %v1151_v10, %v1135_v40  ;;  %v770_v27 = vadd.f32 %v769_v13, %v768_v1 }
 0x31a   : > { %v764_v21 = vadd.f32 %v763_v14, %v762_v7  ;;  %v786_v22 = vadd.f32 %v785_v16, %v784_v9  ;;  %v772_v24 = vadd.f32 %v771_v19, %v753_v12  ;;  %v757_v26 = vmul.f32 %v1153_v17, %v1137_v41 }
 0x31b   : > { %v779_v23 = vrot.slane %v778_v18, 2  ;;  %v801_v25 = vrot.slane %v758_v20, 4  ;;  %v793_v28 = vrot.slane %v792_v15, 1  ;;  %v808_v40 = vmul.f32 0.125, %v770_v27 }
 0x31c   : > { %v787_v29 = vrot.slane %v786_v22, 1  ;;  %v773_v31 = vrot.slane %v772_v24, 2  ;;  %v795_v33 = vrot.slane %v757_v26, 4  ;;  %v807_v34 = vmul.f32 0.125, %v764_v21 }
 0x31d   : > { %v780_v30 = vadd.f32 %v779_v23, %v778_v18  ;;  %v802_v32 = vadd.f32 %v801_v25, %v758_v20  ;;  %v794_v42 = vadd.f32 %v793_v28, %v792_v15 }
 0x31e   : > { %v788_v35 = vadd.f32 %v787_v29, %v786_v22  ;;  %v774_v37 = vadd.f32 %v773_v31, %v772_v24  ;;  %v796_v39 = vadd.f32 %v795_v33, %v757_v26  ;;  %1154 = vlog2.f32 %v807_v34 }
 0x31f   : > { %v781_v36 = vrot.slane %v780_v30, 1  ;;  %v803_v38 = vrot.slane %v802_v32, 2  ;;  %1156 = vlog2.f32 %v808_v40  ;;  %v812_v51 = vmul.f32 0.125, %v794_v42 }
 0x320   : > { %v811_v43 = vmul.f32 0.125, %v788_v35  ;;  %v775_v45 = vrot.slane %v774_v37, 1  ;;  %v797_v41 = vrot.slane %v796_v39, 2 }
 0x321   : > { %v782_v44 = vadd.f32 %v781_v36, %v780_v30  ;;  %v804_v46 = vadd.f32 %v803_v38, %v802_v32 }
 0x322   : > { %v776_v48 = vadd.f32 %v775_v45, %v774_v37  ;;  %v798_v49 = vadd.f32 %v797_v41, %v796_v39  ;;  %1158 = vlog2.f32 %v811_v43 }
 0x323   : > { %v810_v47 = vmul.f32 0.125, %v782_v44  ;;  %v805_v50 = vrot.slane %v804_v46, 1 }
 0x324   : > { %v809_v52 = vmul.f32 0.125, %v776_v48  ;;  %v799_v53 = vrot.slane %v798_v49, 1 }
 0x325   : > { %v806_v54 = vadd.f32 %v805_v50, %v804_v46  ;;  %1160 = vlog2.f32 %v810_v47 }
 0x326   : > { %1162 = vlog2.f32 %v809_v52  ;;  %v800_v55 = vadd.f32 %v799_v53, %v798_v49 }
 0x327   : > { %v814_v56 = vmul.f32 0.125, %v806_v54  ;;  %1164 = vlog2.f32 %v812_v51 }
 0x328   : > { %v813_v57 = vmul.f32 0.125, %v800_v55 }
 0x329   : > { %1166 = vlog2.f32 %v814_v56 }
 0x32a   : > { %1168 = vlog2.f32 %v813_v57 }
 0x32b   : > { %v1155_v58 = vpop.eup %1154 }
 0x32c   : > { %v1157_v59 = vpop.eup %1156  ;;  %v816_v61 = vmul.f32 0.6931472, %v1155_v58 }
 0x32d   : > { %v818_v0 = vmul.f32 0.6931472, %v1157_v59 }
 0x32f   : > { %v1159_v60 = vpop.eup %1158  ;;  %v840_v4 = vsel %vm839_vm1, %v818_v0, %v816_v61 }
 0x330   : > { %v824_v6 = vmul.f32 0.6931472, %v1159_v60 }
 0x332   : > { %v1161_v62 = vpop.eup %1160 }
 0x333   : > { %v1163_v63 = vpop.eup %1162  ;;  %v822_v3 = vmul.f32 0.6931472, %v1161_v62 }
 0x334   : > { %v1165_v1 = vpop.eup %1164  ;;  %v820_v2 = vmul.f32 0.6931472, %v1163_v63 }
 0x335   : > { %v826_v9 = vmul.f32 0.6931472, %v1165_v1 }
 0x336   : > { %v1167_v5 = vpop.eup %1166  ;;  %v842_v7 = vsel %vm841_vm2, %v820_v2, %v840_v4 }
 0x337   : > { %v1169_v8 = vpop.eup %1168  ;;  %v844_v10 = vsel %vm843_vm3, %v822_v3, %v842_v7  ;;  %v830_v13 = vmul.f32 0.6931472, %v1167_v5 }
 0x338   : > { %v828_v11 = vmul.f32 0.6931472, %v1169_v8  ;;  %v846_v12 = vsel %vm845_vm4, %v824_v6, %v844_v10 }
 0x339   : > { %v848_v14 = vsel %vm847_vm5, %v826_v9, %v846_v12 }
 0x33a   : > { %v850_v15 = vsel %vm849_vm6, %v828_v11, %v848_v14 }
 0x33b   : > { %v852_v16 = vsel %vm851_vm7, %v830_v13, %v850_v15 }
 0x33c   : > { %854 = vst [vmem:[%s322_s24] sm:$0xff] %v852_v16 }
 0x33d   : > { %1265 = shalt.err (!%p1262_p2)
}
 0x33e   : > { %s1266_s22 = scalar_lea.hbm %s1585_s13, 128  ;;  %s1270_s29 = scalar_lea.hbm %s1628_s6, 256 }
 0x33f   : > { %p1267_p1 = scmp.ne.s32.totalorder %s1585_s13, %s1266_s22  ;;  %p1271_p6 = scmp.lt.s32.totalorder %s1585_s13, %s1628_s6 }
 0x340   : > { %p1272_p11 = scmp.lt.s32.totalorder %s1270_s29, %s1266_s22 }
 0x341   : > { %p1268_p4 = pnand %p1267_p1, %p1646_p9 }
 0x342   : > { %p1273_p8 = por %p1272_p11, %p1271_p6 }
 0x343   : > { %p1269_p7 = pneg %p1268_p4 }
 0x345   : > { %p1274_p3 = pnand %p1273_p8, %p1269_p7 }
 0x347   : > { %1277 = shalt.err (!%p1274_p3)
}
 0x348   : > { %1047 = dma.vmem_to_hbm [thread:$0]  (%p1646_p9), %s870_s1, 128, %s1585_s13, %s856_s12  }
 0x349 PF: > { %s881_s17 = sand.u32 1, %s1312_s25   ;;  %p1647_p10 = scmp.ne.s32.totalorder %s1635_s30, 0 }
 0x34a   : > { %p1648_p12 = scmp.ge.s32.totalorder %s1324_s28, 2  ;;  %s882_s23 = scalar_lea.sflag [#allocation6], %s881_s17 }
 0x34c   : > { %p1061_p13 = pnand %p1648_p12, %p1647_p10 }
 0x34e   : > { %p1062_p0 = pneg %p1061_p13 }
 0x350   : > { %1307 = dma.done.wait (%p1062_p0), %s882_s23, 128  }
 0x351   : > { %1309 = vsyncadd (%p1062_p0), %s882_s23, 4294967168  ;;  %p24_p5 = scmp.ge.s32.totalorder %s1428_s11, 4   ;;  %s1649_s25 = smov %s1316_s26 }
 0x352   : > { %s1650_s26 = smov %s1320_s27  ;;  %s1651_s27 = smov %s1448_s19 }
 0x353   : > { %s1652_s28 = smov %s1428_s11  ;;  %26 = sbr.rel (!%p24_p5) target bundleno = 10 (0xa), region = 106 }
 0x358   :  { %887 = vsyncpa [#allocation5], 1 }
 0x359   :  { %889 = vsyncpa [#allocation5 + $0x1], 1 }
 0x35a   :  { %890 = vsyncpa [#allocation8], 1 }
 0x35b   :  { %892 = vsyncpa [#allocation8 + $0x1], 1 }
 0x35c   :  { %893 = vsyncpa [#allocation6], 1 }
 0x35d   :  { %895 = vsyncpa [#allocation6 + $0x1], 1 }

</bundles_post_ra>
